<compile_context>
chip_gen: v7x
topology: tpu7x:2x2x1
jax: 0.10.0
libtpu: 0.0.40
codegen_flags: <defaults>
</compile_context>

<pallas_src>
import math

import jax
import jax.numpy as jnp
from jax import lax
from jax.experimental import pallas as pl
from jax.experimental.pallas import tpu as pltpu


_LANE = 128
_SUBLANE = 8
_CHUNK_ROWS = 16                     # 16 sublanes/chunk: valid f32 & bf16 tiling
_COL_GROUP = _CHUNK_ROWS * _LANE     # 2048 experiences per row-group


def _cdiv(a, b):
    return -(-a // b)


def _round_up(a, b):
    return _cdiv(a, b) * b


def _entropy_loss_kernel(x_ref, out_ref):
    """One grid step.

    x_ref:   VMEM (A, R, 128) block   -- action scores, experiences lane-dense
    out_ref: VMEM (8, 128) f32        -- per-block partial of sum_A p*log p
    """
    a, r, _ = x_ref.shape
    n_chunks = r // _CHUNK_ROWS      # static: r is always a multiple of 16

    def chunk_body(c, acc):
        row0 = pl.multiple_of(c * _CHUNK_ROWS, _CHUNK_ROWS)
        # Load + upcast each action slice exactly once; shared by both passes.
        xs = [x_ref[i, pl.ds(row0, _CHUNK_ROWS), :].astype(jnp.float32)
              for i in range(a)]

        # Running max over the small leading A axis (full-width VPU work).
        m = xs[0]
        for i in range(1, a):
            m = jnp.maximum(m, xs[i])

        z = jnp.zeros_like(m)    # sum_A exp(x - m)
        es = jnp.zeros_like(m)   # sum_A exp(x - m) * (x - m)
        for i in range(a):
            s = xs[i] - m
            e = jnp.exp(s)                                   # EUP
            z = z + e
            es = es + e * s

        # sum_A p*log p == (sum_A e*s)/z - log z   (per experience).
        # approx reciprocal -> EUP slot, off the VALU critical slot.
        ent = es * pl.reciprocal(z, approx=True) - jnp.log(z)   # (16, 128)

        # Collapse the chunk to a lane-dense (8, 128) partial with vreg adds.
        part = ent[0:_SUBLANE, :]
        for k in range(1, _CHUNK_ROWS // _SUBLANE):
            part = part + ent[k * _SUBLANE:(k + 1) * _SUBLANE, :]
        return acc + part

    acc = lax.fori_loop(0, n_chunks, chunk_body,
                        jnp.zeros((_SUBLANE, _LANE), jnp.float32),
                        unroll=min(4, n_chunks))
    out_ref[...] = acc


def _choose_tile(n, a, itemsize, max_tile_cols=None):
    """Experiences per block (multiple of 2048) and number of grid blocks."""
    if max_tile_cols is None:
        # ~8 MiB of input per block: post-chunking temporaries are a handful of
        # vregs, so double-buffered input (<= 16 MiB) dominates -- well inside
        # the 32 MiB scoped VMEM limit on v5e/v6e/v7x.
        max_tile_cols = (8 * 1024 * 1024) // (a * itemsize)
        # Megacore: keep num_blocks >= 2 whenever there is more than one
        # column-group of data so the "parallel" grid axis feeds both v7x TCs.
        if n > _COL_GROUP:
            max_tile_cols = min(max_tile_cols,
                                _round_up(_cdiv(n, 2), _COL_GROUP))
    max_tile_cols = max(_COL_GROUP, (max_tile_cols // _COL_GROUP) * _COL_GROUP)
    num_blocks = _cdiv(n, max_tile_cols)
    tile_cols = min(_round_up(_cdiv(n, num_blocks), _COL_GROUP), max_tile_cols)
    return tile_cols, num_blocks


def action_entropy_loss(action_scores, n_actions, beta=1.0, *,
                        use_pallas=None, max_tile_cols=None):
    """JAX/Pallas equivalent of ActionEntropyLoss(n_actions, beta).forward."""
    if isinstance(action_scores, tuple):
        action_scores, _ = action_scores
    n, a = action_scores.shape
    max_entropy = -math.log(1.0 / n_actions)  # == log(n_actions)

    if use_pallas is None:
        # Tiny problems: fixed pallas_call overhead dwarfs the actual work.
        use_pallas = n * a * action_scores.dtype.itemsize >= (1 << 18)
    if not use_pallas:
        x = action_scores.astype(jnp.float32)
        logp = jax.nn.log_softmax(x, axis=1)
        loss_e = jnp.sum(jnp.exp(logp) * logp, axis=1).mean() / max_entropy * beta
        return loss_e, dict(loss_e=loss_e)

    tile_cols, num_blocks = _choose_tile(
        n, a, action_scores.dtype.itemsize, max_tile_cols)
    n_pad = tile_cols * num_blocks
    rows_per_blk = tile_cols // _LANE

    # Layout plumbing: lane-dense experiences, input dtype preserved through
    # HBM -> VMEM (bf16 stays bf16, halving HBM traffic). Padding MUST be
    # zeros: each zero column's entropy is exactly log(1/A), removed
    # analytically below.
    # TODO(synk): on v5e this transpose/pad is the dominant HBM cost; ideally
    # the producer already emits scores as (A, N) (or a roll-based
    # transpose-free kernel) so the kernel's single read is the only pass.
    x_t = jnp.pad(jnp.transpose(action_scores), ((0, 0), (0, n_pad - n)))
    x_t = x_t.reshape(a, n_pad // _LANE, _LANE)          # free row-major reshape

    partials = pl.pallas_call(
        _entropy_loss_kernel,
        out_shape=jax.ShapeDtypeStruct((num_blocks * _SUBLANE, _LANE),
                                       jnp.float32),
        grid_spec=pltpu.PrefetchScalarGridSpec(
            num_scalar_prefetch=0,
            grid=(num_blocks,),
            in_specs=[pl.BlockSpec((a, rows_per_blk, _LANE),
                                   lambda i: (0, i, 0))],
            out_specs=pl.BlockSpec((_SUBLANE, _LANE),
                                   lambda i: (i, 0)),
        ),
        compiler_params=pltpu.CompilerParams(
            dimension_semantics=("parallel",),       # shards across v7x's 2 TCs
            vmem_limit_bytes=32 * 1024 * 1024,
        ),
    )(x_t)

    # Each zero-padded column contributed log(1/A) = -log(A) to the partial
    # sum; add +(n_pad - n)*log(A) to remove it, then mean over N,
    # / max_entropy, * beta (all outside the kernel).
    total = jnp.sum(partials) + (n_pad - n) * math.log(a)
    loss_e = total * (beta / (max_entropy * n))
    return loss_e, dict(loss_e=loss_e)


def _reference(action_scores, n_actions, beta=1.0):
    x = action_scores.astype(jnp.float32)
    logp = jax.nn.log_softmax(x, axis=1)
    p = jax.nn.softmax(x, axis=1)
    return jnp.sum(p * logp, axis=1).mean() / math.log(n_actions) * beta


if __name__ == "__main__":
    key = jax.random.PRNGKey(0)

    # ((N, A), dtype, beta, forced max experiences per block (None = auto))
    cases = [
        ((8, 4), jnp.float32, 1.0, None),       # tiny case forced through the kernel (heavy padding)
        ((2600, 6), jnp.bfloat16, 0.7, 2048),   # multi-block grid + padded tail, bf16 input
        ((4133, 8), jnp.float32, 1.0, None),    # auto tiling + megacore >=2 block clamp
    ]
    for (n, a), dtype, beta, max_cols in cases:
        key, sub = jax.random.split(key)
        scores = jax.random.normal(sub, (n, a), dtype=jnp.float32).astype(dtype)
        loss_e, info = action_entropy_loss(scores, n_actions=a, beta=beta,
                                           use_pallas=True,
                                           max_tile_cols=max_cols)
        loss_e = jax.block_until_ready(loss_e)
        ref = jax.block_until_ready(_reference(scores, a, beta=beta))
        # Tolerance loosened for approx EUP reciprocal (~2^-12 relative) and
        # the analytic padding correction's f32 cancellation.
        assert jnp.allclose(loss_e, ref, atol=1e-3, rtol=1e-3), \
            ((n, a), float(loss_e), float(ref))

    print("KERNEL_OK")
</pallas_src>

<mosaic_0001>
module attributes {stable_mosaic.version = 11 : i64} {
  func.func @_entropy_loss_kernel(%arg0: i32, %arg1: memref<4x16x128xf32, #tpu.memory_space<vmem>>, %arg2: memref<8x128xf32, #tpu.memory_space<vmem>>) attributes {dimension_semantics = [#tpu.dimension_semantics<parallel>], iteration_bounds = array<i64: 1>, scalar_prefetch = 0 : i64, scratch_operands = 0 : i64, tpu.core_type = #tpu.core_type<tc>, window_params = [{transform_indices = @transform_0, window_bounds = array<i64: 4, 16, 128>}, {transform_indices = @transform_1, window_bounds = array<i64: 8, 128>}]} {
    %cst = arith.constant 0.000000e+00 : f32
    %0 = vector.broadcast %cst : f32 to vector<8x128xf32>
    %c0_i32 = arith.constant 0 : i32
    %c16_i32 = arith.constant 16 : i32
    %1 = arith.muli %c0_i32, %c16_i32 : i32
    %2 = tpu.assume_multiple %1, 16 : i32
    %c0 = arith.constant 0 : index
    %3 = arith.index_cast %2 : i32 to index
    %c0_0 = arith.constant 0 : index
    %4 = vector.load %arg1[%c0, %3, %c0_0] : memref<4x16x128xf32, #tpu.memory_space<vmem>>, vector<1x16x128xf32>
    %5 = vector.shape_cast %4 : vector<1x16x128xf32> to vector<16x128xf32>
    %c1 = arith.constant 1 : index
    %6 = arith.index_cast %2 : i32 to index
    %c0_1 = arith.constant 0 : index
    %7 = vector.load %arg1[%c1, %6, %c0_1] : memref<4x16x128xf32, #tpu.memory_space<vmem>>, vector<1x16x128xf32>
    %8 = vector.shape_cast %7 : vector<1x16x128xf32> to vector<16x128xf32>
    %c2 = arith.constant 2 : index
    %9 = arith.index_cast %2 : i32 to index
    %c0_2 = arith.constant 0 : index
    %10 = vector.load %arg1[%c2, %9, %c0_2] : memref<4x16x128xf32, #tpu.memory_space<vmem>>, vector<1x16x128xf32>
    %11 = vector.shape_cast %10 : vector<1x16x128xf32> to vector<16x128xf32>
    %c3 = arith.constant 3 : index
    %12 = arith.index_cast %2 : i32 to index
    %c0_3 = arith.constant 0 : index
    %13 = vector.load %arg1[%c3, %12, %c0_3] : memref<4x16x128xf32, #tpu.memory_space<vmem>>, vector<1x16x128xf32>
    %14 = vector.shape_cast %13 : vector<1x16x128xf32> to vector<16x128xf32>
    %15 = arith.maximumf %5, %8 : vector<16x128xf32>
    %16 = arith.maximumf %15, %11 : vector<16x128xf32>
    %17 = arith.maximumf %16, %14 : vector<16x128xf32>
    %cst_4 = arith.constant 0.000000e+00 : f32
    %18 = vector.broadcast %cst_4 : f32 to vector<16x128xf32>
    %cst_5 = arith.constant 0.000000e+00 : f32
    %19 = vector.broadcast %cst_5 : f32 to vector<16x128xf32>
    %20 = arith.subf %5, %17 : vector<16x128xf32>
    %21 = math.exp %20 : vector<16x128xf32>
    %22 = arith.addf %18, %21 : vector<16x128xf32>
    %23 = arith.mulf %21, %20 : vector<16x128xf32>
    %24 = arith.addf %19, %23 : vector<16x128xf32>
    %25 = arith.subf %8, %17 : vector<16x128xf32>
    %26 = math.exp %25 : vector<16x128xf32>
    %27 = arith.addf %22, %26 : vector<16x128xf32>
    %28 = arith.mulf %26, %25 : vector<16x128xf32>
    %29 = arith.addf %24, %28 : vector<16x128xf32>
    %30 = arith.subf %11, %17 : vector<16x128xf32>
    %31 = math.exp %30 : vector<16x128xf32>
    %32 = arith.addf %27, %31 : vector<16x128xf32>
    %33 = arith.mulf %31, %30 : vector<16x128xf32>
    %34 = arith.addf %29, %33 : vector<16x128xf32>
    %35 = arith.subf %14, %17 : vector<16x128xf32>
    %36 = math.exp %35 : vector<16x128xf32>
    %37 = arith.addf %32, %36 : vector<16x128xf32>
    %38 = arith.mulf %36, %35 : vector<16x128xf32>
    %39 = arith.addf %34, %38 : vector<16x128xf32>
    %40 = tpu.reciprocal %37 {approx = true} : vector<16x128xf32> -> vector<16x128xf32>
    %41 = arith.mulf %39, %40 : vector<16x128xf32>
    %42 = math.log %37 : vector<16x128xf32>
    %43 = arith.subf %41, %42 : vector<16x128xf32>
    %44 = vector.extract_strided_slice %43 {offsets = [0, 0], sizes = [8, 128], strides = [1, 1]} : vector<16x128xf32> to vector<8x128xf32>
    %45 = vector.extract_strided_slice %43 {offsets = [8, 0], sizes = [8, 128], strides = [1, 1]} : vector<16x128xf32> to vector<8x128xf32>
    %46 = arith.addf %44, %45 : vector<8x128xf32>
    %47 = arith.addf %0, %46 : vector<8x128xf32>
    %c1_i32 = arith.constant 1 : i32
    %c0_6 = arith.constant 0 : index
    %c0_7 = arith.constant 0 : index
    %48 = vector.load %arg2[%c0_6, %c0_7] : memref<8x128xf32, #tpu.memory_space<vmem>>, vector<8x128xf32>
    tpu.vector_store %arg2[%c0_6, %c0_7], %47 {strides = array<i32>} : memref<8x128xf32, #tpu.memory_space<vmem>>, vector<8x128xf32>,
    return
  }
  func.func @transform_0(%arg0: i32) -> (i32, i32, i32) {
    %c0_i32 = arith.constant 0 : i32
    %c0_i32_0 = arith.constant 0 : i32
    %c0_i32_1 = arith.constant 0 : i32
    return %c0_i32, %arg0, %c0_i32_0 : i32, i32, i32
  }
  func.func @transform_1(%arg0: i32) -> (i32, i32) {
    %c0_i32 = arith.constant 0 : i32
    %c0_i32_0 = arith.constant 0 : i32
    return %arg0, %c0_i32 : i32, i32
  }
}

</mosaic_0001>

<bundles_post_ra>
// kernel: tpu_custom_call.1
= control target key start
LH: loop header
LB: loop body
LE: loop exit
PB: predicated region body
PF: predicated region fallthrough
CT: control target
= control target key end

     0   :  { %6 = vsyncpa [#allocation3], 0  ;;  %s236_s0 = inlined_call_operand.hbm [shape: f32[4,16,128], index: 0, kind: input, shape index: {}]   ;;  %s237_s1 = inlined_call_operand.hbm [shape: f32[8,128], index: 1, kind: output, shape index: {}]  }
   0x1   :  { %7 = vsyncpa [#allocation4], 0  ;;  %s198_s6 = smov [#allocation2]   ;;  %s150_s10 = scalar_lea.hbm %s236_s0, 1024 }
   0x2   :  { %s13_s7 = sshll.u32 %s198_s6, 4  ;;  %p151_p0 = scmp.ne.s32.totalorder %s236_s0, %s150_s10  ;;  %s14_s7 = int_to_ptr.vmem [resolvable:$true] %s13_s7 }
   0x3   :  { %p154_p1 = scmp.lt.u32.totalorder %s150_s10, %s236_s0 }
   0x5   :  { %p156_p2 = pnand %p154_p1, %p151_p0 }
   0x7   :  { %159 = shalt.err (!%p156_p2)
}
   0x8   :  { %s160_s15 = scalar_lea.vmem %s14_s7, 1024  ;;  %p165_p4 = scmp.lt.s32.totalorder %s14_s7, %s14_s7 }
   0x9   :  { %p161_p3 = scmp.ne.s32.totalorder %s14_s7, %s160_s15  ;;  %p166_p5 = scmp.lt.s32.totalorder %s160_s15, %s160_s15 }
   0xb   :  { %p167_p6 = por %p166_p5, %p165_p4 }
   0xd   :  { %p168_p7 = pnand %p167_p6, %p161_p3 }
   0xf   :  { %171 = shalt.err (!%p168_p7)
}
  0x10   :  { %s199_s16 = smov 128   ;;  %s200_s17 = smov 8  }
  0x11   :  { %19 = dma.hbm_to_vmem [thread:$0]  %s236_s0, 1024, %s14_s7, [#allocation3], %s199_s16, %s199_s16, %s200_s17  }
  0x12   :  { %194 = dma.done.wait [#allocation3], 1024  }
  0x13   :  { %195 = vsyncadd [#allocation3], 4294966272  ;;  %v23_v0 = vld [vmem:[#allocation2] sm:$0xff]  ;;  %v24_v1 = vld [vmem:[#allocation2 + $0x8] sm:$0xff]  ;;  %s201_s0 = smov [#allocation5]  }
  0x14   :  { %v27_v2 = vld [vmem:[#allocation2 + $0x10] sm:$0xff]  ;;  %v28_v3 = vld [vmem:[#allocation2 + $0x18] sm:$0xff]  ;;  %v31_v4 = vld [vmem:[#allocation2 + $0x20] sm:$0xff]  ;;  %s110_s20 = sshll.u32 %s201_s0, 4  ;;  %s111_s20 = int_to_ptr.vmem [resolvable:$true] %s110_s20 }
  0x15   :  { %v32_v5 = vld [vmem:[#allocation2 + $0x28] sm:$0xff]  ;;  %v37_v6 = vmax.f32 %v23_v0, %v27_v2  ;;  %v35_v7 = vld [vmem:[#allocation2 + $0x30] sm:$0xff]  ;;  %v38_v8 = vmax.f32 %v24_v1, %v28_v3  ;;  %v36_v9 = vld [vmem:[#allocation2 + $0x38] sm:$0xff]  ;;  %s172_s21 = scalar_lea.vmem %s111_s20, 128  ;;  %p177_p9 = scmp.lt.s32.totalorder %s111_s20, %s111_s20 }
  0x16   :  { %p173_p8 = scmp.ne.s32.totalorder %s111_s20, %s172_s21  ;;  %p178_p10 = scmp.lt.s32.totalorder %s172_s21, %s172_s21 }
  0x17   :  { %v39_v10 = vmax.f32 %v37_v6, %v31_v4  ;;  %v40_v11 = vmax.f32 %v38_v8, %v32_v5 }
  0x18   :  { %p179_p11 = por %p178_p10, %p177_p9 }
  0x19   :  { %v41_v12 = vmax.f32 %v39_v10, %v35_v7  ;;  %v42_v13 = vmax.f32 %v40_v11, %v36_v9 }
  0x1a   :  { %p180_p12 = pnand %p179_p11, %p173_p8 }
  0x1b   :  { %v43_v14 = vsub.f32 %v23_v0, %v41_v12  ;;  %v55_v15 = vsub.f32 %v27_v2, %v41_v12  ;;  %v67_v16 = vsub.f32 %v31_v4, %v41_v12  ;;  %v44_v17 = vsub.f32 %v24_v1, %v42_v13 }
  0x1c   :  { %v56_v18 = vsub.f32 %v28_v3, %v42_v13  ;;  %v68_v19 = vsub.f32 %v32_v5, %v42_v13  ;;  %v79_v22 = vsub.f32 %v35_v7, %v41_v12  ;;  %v80_v25 = vsub.f32 %v36_v9, %v42_v13 }
  0x1d   :  { %v45_v20 = vmul.f32 1.442695, %v43_v14  ;;  %v57_v21 = vmul.f32 1.442695, %v55_v15  ;;  %v47_v23 = vmul.f32 1.442695, %v44_v17 }
  0x1e   :  { %v59_v24 = vmul.f32 1.442695, %v56_v18  ;;  %v69_v26 = vmul.f32 1.442695, %v67_v16  ;;  %v71_v27 = vmul.f32 1.442695, %v68_v19 }
  0x1f   :  { %126 = vpow2.f32 %v45_v20  ;;  %v81_v28 = vmul.f32 1.442695, %v79_v22  ;;  %v83_v29 = vmul.f32 1.442695, %v80_v25 }
  0x20   :  { %128 = vpow2.f32 %v47_v23 }
  0x21   :  { %130 = vpow2.f32 %v57_v21 }
  0x22   :  { %132 = vpow2.f32 %v59_v24 }
  0x23   :  { %134 = vpow2.f32 %v69_v26 }
  0x24   :  { %136 = vpow2.f32 %v71_v27 }
  0x25   :  { %138 = vpow2.f32 %v81_v28 }
  0x26   :  { %140 = vpow2.f32 %v83_v29 }
  0x29   :  { %v127_v30 = vpop.eup %126 }
  0x2a   :  { %v129_v31 = vpop.eup %128  ;;  %v51_v36 = vmul.f32 %v127_v30, %v43_v14 }
  0x2b   :  { %v131_v32 = vpop.eup %130  ;;  %v52_v40 = vmul.f32 %v129_v31, %v44_v17 }
  0x2c   :  { %v133_v33 = vpop.eup %132  ;;  %v61_v34 = vadd.f32 %v131_v32, %v127_v30  ;;  %v63_v38 = vmul.f32 %v131_v32, %v55_v15 }
  0x2d   :  { %v135_v35 = vpop.eup %134  ;;  %v62_v37 = vadd.f32 %v133_v33, %v129_v31  ;;  %v64_v41 = vmul.f32 %v133_v33, %v56_v18 }
  0x2e   :  { %v137_v39 = vpop.eup %136  ;;  %v73_v42 = vadd.f32 %v135_v35, %v61_v34  ;;  %v65_v47 = vadd.f32 %v63_v38, %v51_v36  ;;  %v75_v48 = vmul.f32 %v135_v35, %v67_v16 }
  0x2f   :  { %v139_v43 = vpop.eup %138  ;;  %v74_v44 = vadd.f32 %v137_v39, %v62_v37  ;;  %v66_v50 = vadd.f32 %v64_v41, %v52_v40  ;;  %v76_v51 = vmul.f32 %v137_v39, %v68_v19 }
  0x30   :  { %v141_v45 = vpop.eup %140  ;;  %v85_v46 = vadd.f32 %v139_v43, %v73_v42  ;;  %v77_v52 = vadd.f32 %v75_v48, %v65_v47  ;;  %v87_v53 = vmul.f32 %v139_v43, %v79_v22 }
  0x31   :  { %v86_v49 = vadd.f32 %v141_v45, %v74_v44  ;;  %v78_v54 = vadd.f32 %v76_v51, %v66_v50  ;;  %v88_v55 = vmul.f32 %v141_v45, %v80_v25 }
  0x32   :  { %142 = vrcp.f32 %v85_v46  ;;  %v89_v56 = vadd.f32 %v87_v53, %v77_v52 }
  0x33   :  { %144 = vrcp.f32 %v86_v49  ;;  %v90_v57 = vadd.f32 %v88_v55, %v78_v54 }
  0x34   :  { %146 = vlog2.f32 %v85_v46 }
  0x35   :  { %148 = vlog2.f32 %v86_v49 }
  0x3c   :  { %v143_v58 = vpop.eup %142 }
  0x3d   :  { %v145_v59 = vpop.eup %144  ;;  %v93_v60 = vmul.f32 %v143_v58, %v89_v56 }
  0x3e   :  { %v147_v61 = vpop.eup %146  ;;  %v94_v62 = vmul.f32 %v145_v59, %v90_v57 }
  0x3f   :  { %v149_v63 = vpop.eup %148  ;;  %v96_v0 = vmul.f32 0.6931472, %v147_v61 }
  0x40   :  { %v98_v1 = vmul.f32 0.6931472, %v149_v63 }
  0x41   :  { %v99_v2 = vsub.f32 %v93_v60, %v96_v0 }
  0x42   :  { %v100_v3 = vsub.f32 %v94_v62, %v98_v1 }
  0x44   :  { %v101_v4 = vadd.f32 %v100_v3, %v99_v2 }
  0x46   :  { %103 = vst [vmem:[#allocation5] sm:$0xff] %v101_v4 }
  0x47   :  { %183 = shalt.err (!%p180_p12)
}
  0x48   :  { %s184_s24 = scalar_lea.hbm %s237_s1, 128 }
  0x49   :  { %p185_p13 = scmp.ne.s32.totalorder %s237_s1, %s184_s24  ;;  %p188_p0 = scmp.lt.u32.totalorder %s184_s24, %s237_s1 }
  0x4b   :  { %p190_p1 = pnand %p188_p0, %p185_p13 }
  0x4d   :  { %193 = shalt.err (!%p190_p1)
}
  0x4e   :  { %113 = dma.vmem_to_hbm [thread:$0]  %s111_s20, 128, %s237_s1, [#allocation4]  }
  0x4f   :  { %196 = dma.done.wait [#allocation4], 128  }
  0x50   :  { %197 = vsyncadd [#allocation4], 4294967168 }
  0x51   :  { %117 = vsyncpa [#allocation3], 1 }
  0x52   :  { %118 = vsyncpa [#allocation4], 1 }

</bundles_post_ra>
